<compile_context>
chip_gen: v7x
topology: tpu7x:2x2x1
jax: 0.10.0
libtpu: 0.0.40
codegen_flags: <defaults>
</compile_context>

<pallas_src>
import functools

import jax
import jax.numpy as jnp
from jax import lax
from jax.experimental import pallas as pl
from jax.experimental.pallas import tpu as pltpu


def _round_up(n, m):
    return (n + m - 1) // m * m


def acer_kernel(x_ref, w1_ref, b1_ref, wh_ref, bh_ref, out_ref, *,
                n_out, matmul_dtype):
    blk, n_pad = out_ref.shape

    # hidden = relu(x @ W1 + b1); cast x to the MXU operand dtype in-kernel
    # (no wrapper-side astype pass over HBM), accumulate in f32.
    x = x_ref[...].astype(matmul_dtype)
    h = jnp.dot(x, w1_ref[...], preferred_element_type=jnp.float32)
    h = jnp.maximum(h + b1_ref[...], 0.0)

    # fused, 128-lane padded actor|critic head:
    #   lanes [0, N)       -> actor logits
    #   lanes [N, 2N)      -> critic q
    #   lane  2N           -> value (written below)
    #   lanes (2N, n_pad)  -> zero padding (zero weight/bias columns)
    heads = jnp.dot(h.astype(wh_ref.dtype), wh_ref[...],
                    preferred_element_type=jnp.float32) + bh_ref[...]

    lane = lax.broadcasted_iota(jnp.int32, (blk, n_pad), 1)
    actor_mask = lane < n_out
    q_mask = jnp.logical_and(lane >= n_out, lane < 2 * n_out)

    # masked softmax over actor lanes only (q lanes AND zero-pad lanes -> -inf
    # so they contribute nothing to the max / denominator).
    logits = jnp.where(actor_mask, heads, -jnp.inf)
    m = jnp.max(logits, axis=-1, keepdims=True)
    e = jnp.exp(logits - m)                           # exp(-inf) == 0 off-policy
    policy = e * (1.0 / jnp.sum(e, axis=-1, keepdims=True))  # exact recip

    q_vals = jnp.where(q_mask, heads, 0.0)            # q lanes, zero elsewhere

    # value = sum_a policy[a] * q[a]: rotate the q lanes onto the policy lanes
    # (XLU roll, free slot) and reduce; policy is zero outside [0, N).
    q_aligned = pltpu.roll(q_vals, shift=n_pad - n_out, axis=1)
    value = jnp.sum(policy * q_aligned, axis=-1, keepdims=True)

    # single unmasked lane-dense store: [policy | q | value | 0...]
    out_ref[...] = policy + q_vals + jnp.where(lane == 2 * n_out, value, 0.0)


def acer_forward(x, w1, b1, wa, ba, wc, bc, *,
                 matmul_dtype=jnp.float32, block_b=1024):
    """policy, q_value, value = ACER head forward.

    x  : (B, num_inputs) f32
    w1 : (num_inputs, 128), b1: (128,)
    wa/wc : (128, num_outputs), ba/bc: (num_outputs,)
    """
    B, num_inputs = x.shape
    hidden = w1.shape[1]
    n_out = wa.shape[1]
    n_pad = _round_up(2 * n_out + 1, 128)      # lane-dense output slab width

    # --- wrapper-side prep: fuse + pad the actor/critic heads to n_pad lanes.
    w_head = jnp.zeros((hidden, n_pad), matmul_dtype)
    w_head = w_head.at[:, :n_out].set(wa.astype(matmul_dtype))
    w_head = w_head.at[:, n_out:2 * n_out].set(wc.astype(matmul_dtype))
    b_head = jnp.zeros((1, n_pad), jnp.float32)
    b_head = b_head.at[0, :n_out].set(ba.astype(jnp.float32))
    b_head = b_head.at[0, n_out:2 * n_out].set(bc.astype(jnp.float32))
    w1c = w1.astype(matmul_dtype)
    b1c = b1.reshape(1, -1).astype(jnp.float32)

    # --- batch tiling:
    #  * large tiles amortize the ~0.35us per-grid-step pipeline overhead
    #  * rows aligned to the sublane packing of the operand dtype (8 f32 / 16 bf16)
    #  * >=2 grid steps whenever B allows, so the "parallel" batch axis can be
    #    sharded across v7x's two TensorCores.
    row_align = 16 if jnp.dtype(matmul_dtype).itemsize == 2 else 8
    blk = max(row_align, min(block_b, _round_up(pl.cdiv(B, 2), row_align)))
    b_pad = _round_up(B, blk)
    x_p = x if b_pad == B else jnp.pad(x, ((0, b_pad - B), (0, 0)))

    itemsize = jnp.dtype(matmul_dtype).itemsize
    cost = pl.CostEstimate(
        flops=2 * b_pad * (num_inputs * hidden + hidden * n_pad),
        transcendentals=b_pad * n_pad,                    # exp
        bytes_accessed=(b_pad * num_inputs * x.dtype.itemsize   # x (read as-is)
                        + num_inputs * hidden * itemsize        # w1
                        + hidden * n_pad * itemsize             # fused head W
                        + (hidden + n_pad) * 4                  # biases (f32)
                        + b_pad * n_pad * 4),                   # output slab
    )

    kernel = functools.partial(acer_kernel, n_out=n_out,
                               matmul_dtype=matmul_dtype)

    out = pl.pallas_call(
        kernel,
        out_shape=jax.ShapeDtypeStruct((b_pad, n_pad), jnp.float32),
        grid_spec=pltpu.PrefetchScalarGridSpec(
            num_scalar_prefetch=0,
            grid=(b_pad // blk,),
            in_specs=[
                pl.BlockSpec((blk, num_inputs), lambda i: (i, 0)),      # x tile
                pl.BlockSpec((num_inputs, hidden), lambda i: (0, 0)),   # w1 (resident)
                pl.BlockSpec((1, hidden), lambda i: (0, 0)),            # b1
                pl.BlockSpec((hidden, n_pad), lambda i: (0, 0)),        # fused head W
                pl.BlockSpec((1, n_pad), lambda i: (0, 0)),             # fused head b
            ],
            out_specs=pl.BlockSpec((blk, n_pad), lambda i: (i, 0)),
        ),
        compiler_params=pltpu.CompilerParams(
            dimension_semantics=("parallel",),
        ),
        cost_estimate=cost,
    )(x_p, w1c, b1c, w_head, b_head)

    policy = out[:B, :n_out]
    q_value = out[:B, n_out:2 * n_out]
    value = out[:B, 2 * n_out]
    return policy, q_value, value


def xavier_uniform(key, fan_in, fan_out):
    # matches nn.init.xavier_uniform_ on a (fan_out, fan_in) torch weight,
    # returned already transposed to (fan_in, fan_out) for x @ W.
    limit = jnp.sqrt(6.0 / (fan_in + fan_out))
    return jax.random.uniform(key, (fan_in, fan_out), jnp.float32, -limit, limit)


if __name__ == "__main__":
    num_inputs, num_outputs, batch = 32, 16, 8
    key = jax.random.PRNGKey(0)
    k_x, k_w1, k_b1, k_wa, k_ba, k_wc, k_bc = jax.random.split(key, 7)

    x = jax.random.normal(k_x, (batch, num_inputs), jnp.float32)

    w1 = xavier_uniform(k_w1, num_inputs, 128)
    b1 = jax.random.uniform(k_b1, (128,), jnp.float32,
                            -1.0 / jnp.sqrt(num_inputs), 1.0 / jnp.sqrt(num_inputs))
    wa = xavier_uniform(k_wa, 128, num_outputs)
    ba = jax.random.uniform(k_ba, (num_outputs,), jnp.float32,
                            -1.0 / jnp.sqrt(128.0), 1.0 / jnp.sqrt(128.0))
    wc = xavier_uniform(k_wc, 128, num_outputs)
    bc = jax.random.uniform(k_bc, (num_outputs,), jnp.float32,
                            -1.0 / jnp.sqrt(128.0), 1.0 / jnp.sqrt(128.0))

    # plain-JAX reference (f32)
    h_ref = jnp.maximum(x @ w1 + b1[None, :], 0.0)
    pol_ref = jax.nn.softmax(h_ref @ wa + ba[None, :], axis=1)
    q_ref = h_ref @ wc + bc[None, :]
    val_ref = jnp.sum(pol_ref * q_ref, axis=-1)

    # f32 MXU-operand path (default: matches the PyTorch module's numerics)
    fwd_f32 = jax.jit(acer_forward)
    policy, q_value, value = jax.block_until_ready(
        fwd_f32(x, w1, b1, wa, ba, wc, bc))
    assert policy.shape == (batch, num_outputs)
    assert q_value.shape == (batch, num_outputs)
    assert value.shape == (batch,)
    assert jnp.allclose(policy, pol_ref, atol=2e-3, rtol=2e-3)
    assert jnp.allclose(q_value, q_ref, atol=2e-3, rtol=2e-3)
    assert jnp.allclose(value, val_ref, atol=2e-3, rtol=2e-3)
    # exact-reciprocal softmax: rows sum to 1
    assert jnp.allclose(jnp.sum(policy, axis=-1), jnp.ones((batch,)), atol=1e-5)

    # bf16 MXU-operand path (recommended on v6e/v7x: native MXU dtype, half the
    # x / weight DMA bytes; f32 accumulate + f32 softmax math kept), checked
    # against the f32 reference at bf16 tolerance.
    fwd_bf16 = jax.jit(functools.partial(acer_forward, matmul_dtype=jnp.bfloat16))
    policy_b, q_value_b, value_b = jax.block_until_ready(
        fwd_bf16(x, w1, b1, wa, ba, wc, bc))
    assert jnp.allclose(policy_b, pol_ref, atol=3e-2, rtol=3e-2)
    assert jnp.allclose(q_value_b, q_ref, atol=3e-2, rtol=3e-2)
    assert jnp.allclose(value_b, val_ref, atol=3e-2, rtol=3e-2)

    print("KERNEL_OK")
</pallas_src>

<mosaic_0001>
module attributes {stable_mosaic.version = 11 : i64} {
  func.func @acer_kernel(%arg0: i32, %arg1: memref<8x32xf32, #tpu.memory_space<vmem>>, %arg2: memref<32x128xf32, #tpu.memory_space<vmem>>, %arg3: memref<1x128xf32, #tpu.memory_space<vmem>>, %arg4: memref<128x128xf32, #tpu.memory_space<vmem>>, %arg5: memref<1x128xf32, #tpu.memory_space<vmem>>, %arg6: memref<8x128xf32, #tpu.memory_space<vmem>>) attributes {dimension_semantics = [#tpu.dimension_semantics<parallel>], iteration_bounds = array<i64: 1>, scalar_prefetch = 0 : i64, scratch_operands = 0 : i64, tpu.core_type = #tpu.core_type<tc>, window_params = [{transform_indices = @transform_0, window_bounds = array<i64: 8, 32>}, {pipeline_mode = #tpu.pipeline_mode<synchronous>, transform_indices = @transform_1, window_bounds = array<i64: 32, 128>}, {pipeline_mode = #tpu.pipeline_mode<synchronous>, transform_indices = @transform_2, window_bounds = array<i64: 1, 128>}, {pipeline_mode = #tpu.pipeline_mode<synchronous>, transform_indices = @transform_3, window_bounds = array<i64: 128, 128>}, {pipeline_mode = #tpu.pipeline_mode<synchronous>, transform_indices = @transform_4, window_bounds = array<i64: 1, 128>}, {transform_indices = @transform_5, window_bounds = array<i64: 8, 128>}]} {
    %c0 = arith.constant 0 : index
    %c0_0 = arith.constant 0 : index
    %0 = vector.load %arg1[%c0, %c0_0] : memref<8x32xf32, #tpu.memory_space<vmem>>, vector<8x32xf32>
    %c0_1 = arith.constant 0 : index
    %c0_2 = arith.constant 0 : index
    %1 = vector.load %arg2[%c0_1, %c0_2] : memref<32x128xf32, #tpu.memory_space<vmem>>, vector<32x128xf32>
    %cst = arith.constant dense<0.000000e+00> : vector<8x128xf32>
    %2 = tpu.matmul %0, %1, %cst {dimension_numbers = #tpu.dot_dimension_numbers<[1], [0], [0], [1], [0, 0, 1, 1], [], []>} : vector<8x32xf32>, vector<32x128xf32>, vector<8x128xf32> -> vector<8x128xf32>
    %c0_3 = arith.constant 0 : index
    %c0_4 = arith.constant 0 : index
    %3 = vector.load %arg3[%c0_3, %c0_4] : memref<1x128xf32, #tpu.memory_space<vmem>>, vector<1x128xf32>
    %4 = vector.broadcast %3 : vector<1x128xf32> to vector<8x128xf32>
    %5 = arith.addf %2, %4 : vector<8x128xf32>
    %cst_5 = arith.constant 0.000000e+00 : f32
    %6 = vector.broadcast %cst_5 : f32 to vector<8x128xf32>
    %7 = arith.maximumf %5, %6 : vector<8x128xf32>
    %c0_6 = arith.constant 0 : index
    %c0_7 = arith.constant 0 : index
    %8 = vector.load %arg4[%c0_6, %c0_7] : memref<128x128xf32, #tpu.memory_space<vmem>>, vector<128x128xf32>
    %cst_8 = arith.constant dense<0.000000e+00> : vector<8x128xf32>
    %9 = tpu.matmul %7, %8, %cst_8 {dimension_numbers = #tpu.dot_dimension_numbers<[1], [0], [0], [1], [0, 0, 1, 1], [], []>} : vector<8x128xf32>, vector<128x128xf32>, vector<8x128xf32> -> vector<8x128xf32>
    %c0_9 = arith.constant 0 : index
    %c0_10 = arith.constant 0 : index
    %10 = vector.load %arg5[%c0_9, %c0_10] : memref<1x128xf32, #tpu.memory_space<vmem>>, vector<1x128xf32>
    %11 = vector.broadcast %10 : vector<1x128xf32> to vector<8x128xf32>
    %12 = arith.addf %9, %11 : vector<8x128xf32>
    %13 = tpu.iota {dimensions = array<i32: 1>} : vector<8x128xi32>
    %c16_i32 = arith.constant 16 : i32
    %14 = vector.broadcast %c16_i32 : i32 to vector<8x128xi32>
    %15 = arith.cmpi slt, %13, %14 : vector<8x128xi32>
    %c16_i32_11 = arith.constant 16 : i32
    %16 = vector.broadcast %c16_i32_11 : i32 to vector<8x128xi32>
    %17 = arith.cmpi sge, %13, %16 : vector<8x128xi32>
    %c32_i32 = arith.constant 32 : i32
    %18 = vector.broadcast %c32_i32 : i32 to vector<8x128xi32>
    %19 = arith.cmpi slt, %13, %18 : vector<8x128xi32>
    %20 = arith.andi %17, %19 : vector<8x128xi1>
    %cst_12 = arith.constant 0xFF800000 : f32
    %21 = vector.broadcast %cst_12 : f32 to vector<8x128xf32>
    %22 = arith.select %15, %12, %21 : vector<8x128xi1>, vector<8x128xf32>
    %cst_13 = arith.constant dense<0xFF800000> : vector<8xf32>
    %23 = vector.multi_reduction <maximumf>, %22, %cst_13 [1] : vector<8x128xf32> to vector<8xf32>
    %24 = vector.shape_cast %23 : vector<8xf32> to vector<8x1xf32>
    %25 = vector.broadcast %24 : vector<8x1xf32> to vector<8x128xf32>
    %26 = arith.subf %22, %25 : vector<8x128xf32>
    %27 = math.exp %26 : vector<8x128xf32>
    %cst_14 = arith.constant dense<0.000000e+00> : vector<8xf32>
    %28 = vector.multi_reduction <add>, %27, %cst_14 [1] : vector<8x128xf32> to vector<8xf32>
    %29 = vector.shape_cast %28 : vector<8xf32> to vector<8x1xf32>
    %cst_15 = arith.constant 1.000000e+00 : f32
    %30 = vector.broadcast %cst_15 : f32 to vector<8x1xf32>
    %31 = arith.divf %30, %29 : vector<8x1xf32>
    %32 = vector.broadcast %31 : vector<8x1xf32> to vector<8x128xf32>
    %33 = arith.mulf %27, %32 : vector<8x128xf32>
    %cst_16 = arith.constant 0.000000e+00 : f32
    %34 = vector.broadcast %cst_16 : f32 to vector<8x128xf32>
    %35 = arith.select %20, %12, %34 : vector<8x128xi1>, vector<8x128xf32>
    %c112_i32 = arith.constant 112 : i32
    %36 = tpu.dynamic_rotate %35 by %c112_i32 dim 1 : vector<8x128xf32>, i32 -> vector<8x128xf32>
    %37 = arith.mulf %33, %36 : vector<8x128xf32>
    %cst_17 = arith.constant dense<0.000000e+00> : vector<8xf32>
    %38 = vector.multi_reduction <add>, %37, %cst_17 [1] : vector<8x128xf32> to vector<8xf32>
    %39 = vector.shape_cast %38 : vector<8xf32> to vector<8x1xf32>
    %40 = arith.addf %33, %35 : vector<8x128xf32>
    %c32_i32_18 = arith.constant 32 : i32
    %41 = vector.broadcast %c32_i32_18 : i32 to vector<8x128xi32>
    %42 = arith.cmpi eq, %13, %41 : vector<8x128xi32>
    %cst_19 = arith.constant 0.000000e+00 : f32
    %43 = vector.shape_cast %39 : vector<8x1xf32> to vector<8x1xf32>
    %44 = vector.broadcast %43 : vector<8x1xf32> to vector<8x128xf32>
    %45 = vector.broadcast %cst_19 : f32 to vector<8x128xf32>
    %46 = arith.select %42, %44, %45 : vector<8x128xi1>, vector<8x128xf32>
    %47 = arith.addf %40, %46 : vector<8x128xf32>
    %c0_20 = arith.constant 0 : index
    %c0_21 = arith.constant 0 : index
    %48 = vector.load %arg6[%c0_20, %c0_21] : memref<8x128xf32, #tpu.memory_space<vmem>>, vector<8x128xf32>
    tpu.vector_store %arg6[%c0_20, %c0_21], %47 {strides = array<i32>} : memref<8x128xf32, #tpu.memory_space<vmem>>, vector<8x128xf32>,
    return
  }
  func.func @transform_0(%arg0: i32) -> (i32, i32) {
    %c0_i32 = arith.constant 0 : i32
    %c0_i32_0 = arith.constant 0 : i32
    return %arg0, %c0_i32 : i32, i32
  }
  func.func @transform_1(%arg0: i32) -> (i32, i32) {
    %c0_i32 = arith.constant 0 : i32
    %c0_i32_0 = arith.constant 0 : i32
    %c0_i32_1 = arith.constant 0 : i32
    return %c0_i32, %c0_i32_0 : i32, i32
  }
  func.func @transform_2(%arg0: i32) -> (i32, i32) {
    %c0_i32 = arith.constant 0 : i32
    %c0_i32_0 = arith.constant 0 : i32
    %c0_i32_1 = arith.constant 0 : i32
    return %c0_i32, %c0_i32_0 : i32, i32
  }
  func.func @transform_3(%arg0: i32) -> (i32, i32) {
    %c0_i32 = arith.constant 0 : i32
    %c0_i32_0 = arith.constant 0 : i32
    %c0_i32_1 = arith.constant 0 : i32
    return %c0_i32, %c0_i32_0 : i32, i32
  }
  func.func @transform_4(%arg0: i32) -> (i32, i32) {
    %c0_i32 = arith.constant 0 : i32
    %c0_i32_0 = arith.constant 0 : i32
    %c0_i32_1 = arith.constant 0 : i32
    return %c0_i32, %c0_i32_0 : i32, i32
  }
  func.func @transform_5(%arg0: i32) -> (i32, i32) {
    %c0_i32 = arith.constant 0 : i32
    %c0_i32_0 = arith.constant 0 : i32
    return %arg0, %c0_i32 : i32, i32
  }
}

</mosaic_0001>

<bundles_post_ra>
// kernel: acer_forward.1
= control target key start
LH: loop header
LB: loop body
LE: loop exit
PB: predicated region body
PF: predicated region fallthrough
CT: control target
= control target key end

     0   :  { %v341_v0 = vmov 0.0|0.0   ;;  %vm342_vm0 = vmmov 0   ;;  %v343_v4 = vmov 0.0   ;;  %vm32_vm1 = vcmask 261120   ;;  %s447_s1 = inlined_call_operand.vmem [shape: f32[32,128], index: 1, kind: input, shape index: {}]   ;;  %s448_s3 = inlined_call_operand.vmem [shape: f32[128,128], index: 3, kind: input, shape index: {}]   ;;  %s449_s0 = inlined_call_operand.vmem [shape: f32[8,32], index: 0, kind: input, shape index: {}]   ;;  %s450_s2 = inlined_call_operand.vmem [shape: f32[1,128], index: 2, kind: input, shape index: {}]   ;;  %s451_s4 = inlined_call_operand.vmem [shape: f32[1,128], index: 4, kind: input, shape index: {}]   ;;  %s452_s5 = inlined_call_operand.vmem [shape: f32[8,128], index: 5, kind: output, shape index: {}]  }
   0x1   :  { %303 = vmatprep.subr.bf16.mxu0 %v341_v0  ;;  %v21_v1 = vld [vmem:[%s447_s1] sm:$0xff]  ;;  %v22_v2 = vld [vmem:[%s447_s1 + $0x8] sm:$0xff]  ;;  %v23_v3 = vld [vmem:[%s447_s1 + $0x10] sm:$0xff]  ;;  %265 = vmatprep.mubr.msk.f32.mxu0 %vm342_vm0, %v343_v4  ;;  %v200_v38 = vlaneseq }
   0x2   :  { %v304_v5 = vpack.c.bf16 %v22_v2, %v21_v1  ;;  %v24_v6 = vld [vmem:[%s447_s1 + $0x18] sm:$0xff]  ;;  %309 = vmatprep.subr.bf16.mxu1 %v341_v0  ;;  %v107_v7 = vld [vmem:[%s448_s3] sm:$0xff]  ;;  %300 = vmatprep.mubr.msk.f32.mxu1 %vm342_vm0, %v343_v4  ;;  %v108_v8 = vld [vmem:[%s448_s3 + $0x8] sm:$0xff] }
   0x3   :  { %v109_v9 = vld [vmem:[%s448_s3 + $0x10] sm:$0xff]  ;;  %v110_v10 = vld [vmem:[%s448_s3 + $0x18] sm:$0xff]  ;;  %v307_v11 = vpack.c.bf16 %v24_v6, %v23_v3  ;;  %v310_v12 = vpack.c.bf16 %v108_v8, %v107_v7  ;;  %v111_v14 = vld [vmem:[%s448_s3 + $0x20] sm:$0xff]  ;;  %v201_v39 = vand.u32 127, %v200_v38 }
   0x4   :  { %305 = vmatpush3.bf16.msra.mxu0 %v304_v5  ;;  %v313_v13 = vpack.c.bf16 %v110_v10, %v109_v9  ;;  %v112_v15 = vld [vmem:[%s448_s3 + $0x28] sm:$0xff]  ;;  %v20_v16 = vld [vmem:[%s449_s0] sm:$0xff]  ;;  %v113_v18 = vld [vmem:[%s448_s3 + $0x30] sm:$0xff] }
   0x5   :  { %306 = vmatprep.subr.bf16.mxu0 %v341_v0  ;;  %311 = vmatpush3.bf16.msra.mxu1 %v310_v12  ;;  %v316_v17 = vpack.c.bf16 %v112_v15, %v111_v14  ;;  %v114_v19 = vld [vmem:[%s448_s3 + $0x38] sm:$0xff]  ;;  %v115_v21 = vld [vmem:[%s448_s3 + $0x40] sm:$0xff]  ;;  %v116_v22 = vld [vmem:[%s448_s3 + $0x48] sm:$0xff]  ;;  %vm203_vm2 = vcmp.ge.s32.totalorder %v201_v39, 16  ;;  %vm204_vm3 = vcmp.lt.s32.totalorder %v201_v39, 32  ;;  %vm202_vm5 = vcmp.lt.s32.totalorder %v201_v39, 16 }
   0x6   :  { %312 = vmatprep.subr.bf16.mxu1 %v341_v0  ;;  %v319_v20 = vpack.c.bf16 %v114_v19, %v113_v18  ;;  %v322_v23 = vpack.c.bf16 %v116_v22, %v115_v21  ;;  %v117_v24 = vld [vmem:[%s448_s3 + $0x50] sm:$0xff]  ;;  %v118_v25 = vld [vmem:[%s448_s3 + $0x58] sm:$0xff]  ;;  %v119_v27 = vld [vmem:[%s448_s3 + $0x60] sm:$0xff]  ;;  %vm224_vm6 = vcmp.eq.s32.totalorder %v201_v39, 32 }
   0x7   :  { %v325_v26 = vpack.c.bf16 %v118_v25, %v117_v24  ;;  %v120_v28 = vld [vmem:[%s448_s3 + $0x68] sm:$0xff]  ;;  %v121_v30 = vld [vmem:[%s448_s3 + $0x70] sm:$0xff]  ;;  %v122_v31 = vld [vmem:[%s448_s3 + $0x78] sm:$0xff] }
   0x8   :  { %308 = vmatpush3.bf16.msra.mxu0 %v307_v11  ;;  %v328_v29 = vpack.c.bf16 %v120_v28, %v119_v27  ;;  %v331_v32 = vpack.c.bf16 %v122_v31, %v121_v30  ;;  %v232_v33 = vld [vmem:[%s450_s2] ss:$0 sm:$0xff]  ;;  %vm205_vm4 = vmand %vm203_vm2, %vm204_vm3  ;;  %s344_s2 = smov 112  }
   0x9   :  { %314 = vmatpush3.bf16.msra.mxu1 %v313_v13  ;;  %v234_v40 = vld [vmem:[%s451_s4] ss:$0 sm:$0xff] }
   0xa   :  { %315 = vmatprep.subr.bf16.mxu1 %v341_v0 }
   0xb   :  { %266 = vmatmul.mubr.msk.f32.vlgmr.msra.gmra.mrb[0].mxu0 %vm32_vm1, %v20_v16 }
   0xd   :  { %317 = vmatpush3.bf16.msra.mxu1 %v316_v17 }
   0xe   :  { %318 = vmatprep.subr.bf16.mxu1 %v341_v0 }
  0x11   :  { %320 = vmatpush3.bf16.msra.mxu1 %v319_v20 }
  0x12   :  { %321 = vmatprep.subr.bf16.mxu1 %v341_v0 }
  0x15   :  { %323 = vmatpush3.bf16.msra.mxu1 %v322_v23 }
  0x16   :  { %324 = vmatprep.subr.bf16.mxu1 %v341_v0 }
  0x19   :  { %326 = vmatpush3.bf16.msra.mxu1 %v325_v26 }
  0x1a   :  { %327 = vmatprep.subr.bf16.mxu1 %v341_v0 }
  0x1d   :  { %329 = vmatpush3.bf16.msra.mxu1 %v328_v29 }
  0x1e   :  { %330 = vmatprep.subr.bf16.mxu1 %v341_v0 }
  0x21   :  { %332 = vmatpush3.bf16.msra.mxu1 %v331_v32 }
  0xde   :  { %v102_v34 = vpop.f32.mrb[0].mxu0 }
  0xdf   :  { %v103_v35 = vadd.f32 %v232_v33, %v102_v34  ;;  %v267_v36 = vpop.f32.mrb[1].mxu0 }
  0xe1   :  { %v106_v37 = vmax.f32 %v103_v35, 0.0 }
  0xe3   :  { %301 = vmatmul.mubr.f32.vlgmr.msra.gmra.mrb[0].mxu1 %v106_v37 }
 0x1b6   :  { %v196_v41 = vpop.f32.mrb[0].mxu1 }
 0x1b7   :  { %v197_v42 = vadd.f32 %v234_v40, %v196_v41  ;;  %v302_v43 = vpop.f32.mrb[1].mxu1 }
 0x1b9   :  { %v217_v44 = vsel %vm205_vm4, %v197_v42, 0.0  ;;  %v206_v45 = vsel %vm202_vm5, %v197_v42, -inf }
 0x1ba   :  { %218 = vrot.lane.b32.xlu1 %v217_v44, %s344_s2  ;;  %207 = vmax.xlane.f32.xlu0 %v206_v45 }
 0x22c   :  { %v219_v53 = vpop.permute.xlu1 %218 }
 0x247   :  { %v208_v46 = vpop.xlane.xlu0 %207 }
 0x248   :  { %v209_v47 = vsub.f32 %v206_v45, %v208_v46 }
 0x24a   :  { %v210_v48 = vmul.f32 1.442695, %v209_v47 }
 0x24c   :  { %337 = vpow2.f32 %v210_v48 }
 0x256   :  { %v338_v49 = vpop.eup %337 }
 0x257   :  { %212 = vadd.xlane.f32.xlu0 %v338_v49 }
 0x2e4   :  { %v213_v50 = vpop.xlane.xlu0 %212 }
 0x2e5   :  { %339 = vrcp.f32 %v213_v50 }
 0x2ef   :  { %v340_v51 = vpop.eup %339 }
 0x2f0   :  { %v216_v52 = vmul.f32 %v340_v51, %v338_v49 }
 0x2f2   :  { %v220_v54 = vmul.f32 %v219_v53, %v216_v52  ;;  %v223_v55 = vadd.f32 %v217_v44, %v216_v52 }
 0x2f4   :  { %221 = vadd.xlane.f32.xlu1 %v220_v54 }
 0x381   :  { %v222_v56 = vpop.xlane.xlu1 %221 }
 0x382   :  { %v225_v57 = vsel %vm224_vm6, %v222_v56, 0.0 }
 0x383   :  { %v226_v58 = vadd.f32 %v225_v57, %v223_v55 }
 0x385   :  { %227 = vst [vmem:[%s452_s5] sm:$0xff] %v226_v58 }

</bundles_post_ra>
